<compile_context>
chip_gen: v6e
topology: v6e:2x2x1
jax: 0.10.0
libtpu: 0.0.40
codegen_flags: <defaults>
</compile_context>

<pallas_src>
import jax
import jax.numpy as jnp
from jax.experimental import pallas as pl
from jax.experimental.pallas import tpu as pltpu


def _round_up(a: int, b: int) -> int:
    return (a + b - 1) // b * b


def _ffn_kernel(x_ref, w1_ref, b1_ref, w2_ref, b2_ref, o_ref, acc_ref):
    # x_ref : (tm, C) bf16     w1_ref: (C, th) bf16    b1_ref: (1, th) f32
    # w2_ref: (th, C) bf16     b2_ref: (1, C)  f32
    # o_ref : (tm, C) out dt   acc_ref: (tm, C) f32 scratch
    h_idx = pl.program_id(1)

    @pl.when(h_idx == 0)
    def _init():
        # Fold the second bias into the accumulator init (no epilogue add).
        acc_ref[...] = jnp.broadcast_to(b2_ref[...], acc_ref.shape)

    # First GEMM tile: (tm, C) @ (C, th) -> f32, + b1, ReLU.
    h = jnp.dot(x_ref[...], w1_ref[...], preferred_element_type=jnp.float32)
    h = jnp.maximum(h + b1_ref[...], 0.0)

    # Second GEMM tile: (tm, th) @ (th, C), accumulated in f32.
    acc_ref[...] += jnp.dot(h.astype(w2_ref.dtype), w2_ref[...],
                            preferred_element_type=jnp.float32)

    @pl.when(h_idx == pl.num_programs(1) - 1)
    def _finalize():
        o_ref[...] = acc_ref[...].astype(o_ref.dtype)


def feed_forward(x, w1, b1, w2, b2, *, tm=256, th=512,
                 compute_dtype=jnp.bfloat16):
    """Fused FFN forward: relu(x @ w1 + b1) @ w2 + b2 (dropout = eval identity).

    x: (..., C).  w1: (C, H), b1: (H,), w2: (H, C), b2: (C,).
    """
    orig_shape = x.shape
    C = orig_shape[-1]
    H = w1.shape[1]

    x2d = x.reshape(-1, C)
    M = x2d.shape[0]

    # Hardware-friendly tiles, clipped for tiny problems (keep (8,128) rules).
    tm = min(tm, _round_up(max(M, 8), 8))      # row tile: multiple of 8
    th = min(th, _round_up(H, 128))            # hidden tile: multiple of 128

    Mp = _round_up(M, tm)
    Hp = _round_up(H, th)

    # bf16 operands for the MXU; biases stay f32 (added onto f32 results).
    xc = x2d.astype(compute_dtype)
    w1c = w1.astype(compute_dtype)
    w2c = w2.astype(compute_dtype)
    b1c = b1.astype(jnp.float32)

    if Mp != M:
        xc = jnp.pad(xc, ((0, Mp - M), (0, 0)))
    if Hp != H:
        # Zero-padded hidden units contribute relu(0 + 0) @ 0 == 0: exact.
        w1c = jnp.pad(w1c, ((0, 0), (0, Hp - H)))
        w2c = jnp.pad(w2c, ((0, Hp - H), (0, 0)))
        b1c = jnp.pad(b1c, (0, Hp - H))

    b1r = b1c.reshape(1, Hp)
    b2r = b2.astype(jnp.float32).reshape(1, C)

    grid = (pl.cdiv(Mp, tm), pl.cdiv(Hp, th))

    itemsize = jnp.dtype(compute_dtype).itemsize
    cost = pl.CostEstimate(
        flops=4 * Mp * C * Hp,                         # two GEMMs
        transcendentals=0,
        bytes_accessed=(Mp * C * itemsize              # x
                        + C * Hp * itemsize            # W1
                        + Hp * C * itemsize            # W2
                        + (Hp + C) * 4                 # biases (f32)
                        + Mp * C * jnp.dtype(x.dtype).itemsize))  # out

    out = pl.pallas_call(
        _ffn_kernel,
        out_shape=jax.ShapeDtypeStruct((Mp, C), x.dtype),
        grid_spec=pltpu.PrefetchScalarGridSpec(
            num_scalar_prefetch=0,
            grid=grid,
            in_specs=[
                pl.BlockSpec((tm, C), lambda i, h: (i, 0)),   # x rows (resident over h)
                pl.BlockSpec((C, th), lambda i, h: (0, h)),   # W1 hidden tile (streamed)
                pl.BlockSpec((1, th), lambda i, h: (0, h)),   # b1 hidden tile
                pl.BlockSpec((th, C), lambda i, h: (h, 0)),   # W2 hidden tile (streamed)
                pl.BlockSpec((1, C), lambda i, h: (0, 0)),    # b2 (constant, tiny)
            ],
            out_specs=pl.BlockSpec((tm, C), lambda i, h: (i, 0)),
            scratch_shapes=[pltpu.VMEM((tm, C), jnp.float32)],
        ),
        compiler_params=pltpu.CompilerParams(
            dimension_semantics=("parallel", "arbitrary"),
            vmem_limit_bytes=56 * 1024 * 1024,
        ),
        cost_estimate=cost,
    )(xc, w1c, b1r, w2c, b2r)

    if Mp != M:
        out = out[:M]
    return out.reshape(orig_shape)


if __name__ == "__main__":
    # Small shapes consistent with the module: (B, T, n_embd), n_embd = 384.
    B, T, n_embd = 2, 8, 384
    hidden = 4 * n_embd

    key = jax.random.PRNGKey(0)
    kx, kw1, kb1, kw2, kb2 = jax.random.split(key, 5)

    x = jax.random.normal(kx, (B, T, n_embd), dtype=jnp.float32)

    # PyTorch Linear default init: U(-1/sqrt(in), 1/sqrt(in)), weights as (in, out).
    s1 = 1.0 / jnp.sqrt(jnp.float32(n_embd))
    s2 = 1.0 / jnp.sqrt(jnp.float32(hidden))
    w1 = jax.random.uniform(kw1, (n_embd, hidden), jnp.float32, -s1, s1)
    b1 = jax.random.uniform(kb1, (hidden,), jnp.float32, -s1, s1)
    w2 = jax.random.uniform(kw2, (hidden, n_embd), jnp.float32, -s2, s2)
    b2 = jax.random.uniform(kb2, (n_embd,), jnp.float32, -s2, s2)

    y = feed_forward(x, w1, b1, w2, b2)
    y = jax.block_until_ready(y)
    assert y.shape == x.shape

    # Reference 1: mirror the kernel's bf16-operand / f32-accumulate math.
    x2d = x.reshape(-1, n_embd)
    h_ref = jnp.dot(x2d.astype(jnp.bfloat16), w1.astype(jnp.bfloat16),
                    preferred_element_type=jnp.float32) + b1
    h_ref = jnp.maximum(h_ref, 0.0)
    ref_bf16 = (jnp.dot(h_ref.astype(jnp.bfloat16), w2.astype(jnp.bfloat16),
                        preferred_element_type=jnp.float32) + b2).reshape(x.shape)
    assert jnp.allclose(y, ref_bf16, atol=2e-3, rtol=2e-3), "mismatch vs bf16 reference"

    # Reference 2: pure-f32 reference (looser tolerance due to bf16 operands).
    ref_f32 = jnp.maximum(x @ w1 + b1, 0.0) @ w2 + b2
    assert jnp.allclose(y, ref_f32, atol=3e-2, rtol=3e-2), "mismatch vs f32 reference"

    print("KERNEL_OK")
</pallas_src>

<mosaic_0001>
module attributes {stable_mosaic.version = 11 : i64} {
  func.func @_ffn_kernel(%arg0: i32, %arg1: i32, %arg2: memref<16x384xbf16, #tpu.memory_space<vmem>>, %arg3: memref<384x512xbf16, #tpu.memory_space<vmem>>, %arg4: memref<1x512xf32, #tpu.memory_space<vmem>>, %arg5: memref<512x384xbf16, #tpu.memory_space<vmem>>, %arg6: memref<1x384xf32, #tpu.memory_space<vmem>>, %arg7: memref<16x384xf32, #tpu.memory_space<vmem>>, %arg8: memref<16x384xf32, #tpu.memory_space<vmem>>) attributes {dimension_semantics = [#tpu.dimension_semantics<parallel>, #tpu.dimension_semantics<arbitrary>], iteration_bounds = array<i64: 1, 3>, scalar_prefetch = 0 : i64, scratch_operands = 1 : i64, tpu.core_type = #tpu.core_type<tc>, window_params = [{transform_indices = @transform_0, window_bounds = array<i64: 16, 384>}, {transform_indices = @transform_1, window_bounds = array<i64: 384, 512>}, {transform_indices = @transform_2, window_bounds = array<i64: 1, 512>}, {transform_indices = @transform_3, window_bounds = array<i64: 512, 384>}, {pipeline_mode = #tpu.pipeline_mode<synchronous>, transform_indices = @transform_4, window_bounds = array<i64: 1, 384>}, {transform_indices = @transform_5, window_bounds = array<i64: 16, 384>}]} {
    %c0_i32 = arith.constant 0 : i32
    %0 = arith.cmpi eq, %arg1, %c0_i32 : i32
    %1 = arith.extui %0 : i1 to i32
    %c0_i32_0 = arith.constant 0 : i32
    %2 = arith.cmpi ne, %1, %c0_i32_0 : i32
    scf.if %2 {
      %c0_15 = arith.constant 0 : index
      %c0_16 = arith.constant 0 : index
      %20 = vector.load %arg6[%c0_15, %c0_16] : memref<1x384xf32, #tpu.memory_space<vmem>>, vector<1x384xf32>
      %21 = vector.shape_cast %20 : vector<1x384xf32> to vector<1x384xf32>
      %22 = vector.broadcast %21 : vector<1x384xf32> to vector<16x384xf32>
      %c0_17 = arith.constant 0 : index
      %c0_18 = arith.constant 0 : index
      %23 = vector.load %arg8[%c0_17, %c0_18] : memref<16x384xf32, #tpu.memory_space<vmem>>, vector<16x384xf32>
      tpu.vector_store %arg8[%c0_17, %c0_18], %22 {strides = array<i32>} : memref<16x384xf32, #tpu.memory_space<vmem>>, vector<16x384xf32>,
    } else {
    }
    %c0 = arith.constant 0 : index
    %c0_1 = arith.constant 0 : index
    %3 = vector.load %arg2[%c0, %c0_1] : memref<16x384xbf16, #tpu.memory_space<vmem>>, vector<16x384xbf16>
    %c0_2 = arith.constant 0 : index
    %c0_3 = arith.constant 0 : index
    %4 = vector.load %arg3[%c0_2, %c0_3] : memref<384x512xbf16, #tpu.memory_space<vmem>>, vector<384x512xbf16>
    %cst = arith.constant dense<0.000000e+00> : vector<16x512xf32>
    %5 = tpu.matmul %3, %4, %cst {dimension_numbers = #tpu.dot_dimension_numbers<[1], [0], [0], [1], [0, 0, 1, 1], [], []>} : vector<16x384xbf16>, vector<384x512xbf16>, vector<16x512xf32> -> vector<16x512xf32>
    %c0_4 = arith.constant 0 : index
    %c0_5 = arith.constant 0 : index
    %6 = vector.load %arg4[%c0_4, %c0_5] : memref<1x512xf32, #tpu.memory_space<vmem>>, vector<1x512xf32>
    %7 = vector.broadcast %6 : vector<1x512xf32> to vector<16x512xf32>
    %8 = arith.addf %5, %7 : vector<16x512xf32>
    %cst_6 = arith.constant 0.000000e+00 : f32
    %9 = vector.broadcast %cst_6 : f32 to vector<16x512xf32>
    %10 = arith.maximumf %8, %9 : vector<16x512xf32>
    %c0_7 = arith.constant 0 : index
    %c0_8 = arith.constant 0 : index
    %11 = vector.load %arg8[%c0_7, %c0_8] : memref<16x384xf32, #tpu.memory_space<vmem>>, vector<16x384xf32>
    %12 = arith.truncf %10 : vector<16x512xf32> to vector<16x512xbf16>
    %c0_9 = arith.constant 0 : index
    %c0_10 = arith.constant 0 : index
    %13 = vector.load %arg5[%c0_9, %c0_10] : memref<512x384xbf16, #tpu.memory_space<vmem>>, vector<512x384xbf16>
    %cst_11 = arith.constant dense<0.000000e+00> : vector<16x384xf32>
    %14 = tpu.matmul %12, %13, %cst_11 {dimension_numbers = #tpu.dot_dimension_numbers<[1], [0], [0], [1], [0, 0, 1, 1], [], []>} : vector<16x512xbf16>, vector<512x384xbf16>, vector<16x384xf32> -> vector<16x384xf32>
    %15 = arith.addf %11, %14 : vector<16x384xf32>
    %c0_12 = arith.constant 0 : index
    %c0_13 = arith.constant 0 : index
    %16 = vector.load %arg8[%c0_12, %c0_13] : memref<16x384xf32, #tpu.memory_space<vmem>>, vector<16x384xf32>
    tpu.vector_store %arg8[%c0_12, %c0_13], %15 {strides = array<i32>} : memref<16x384xf32, #tpu.memory_space<vmem>>, vector<16x384xf32>,
    %c2_i32 = arith.constant 2 : i32
    %17 = arith.cmpi eq, %arg1, %c2_i32 : i32
    %18 = arith.extui %17 : i1 to i32
    %c0_i32_14 = arith.constant 0 : i32
    %19 = arith.cmpi ne, %18, %c0_i32_14 : i32
    scf.if %19 {
      %c0_15 = arith.constant 0 : index
      %c0_16 = arith.constant 0 : index
      %20 = vector.load %arg8[%c0_15, %c0_16] : memref<16x384xf32, #tpu.memory_space<vmem>>, vector<16x384xf32>
      %c0_17 = arith.constant 0 : index
      %c0_18 = arith.constant 0 : index
      %21 = vector.load %arg7[%c0_17, %c0_18] : memref<16x384xf32, #tpu.memory_space<vmem>>, vector<16x384xf32>
      tpu.vector_store %arg7[%c0_17, %c0_18], %20 {strides = array<i32>} : memref<16x384xf32, #tpu.memory_space<vmem>>, vector<16x384xf32>,
    } else {
    }
    return
  }
  func.func @transform_0(%arg0: i32, %arg1: i32) -> (i32, i32) {
    %c0_i32 = arith.constant 0 : i32
    %c0_i32_0 = arith.constant 0 : i32
    return %arg0, %c0_i32 : i32, i32
  }
  func.func @transform_1(%arg0: i32, %arg1: i32) -> (i32, i32) {
    %c0_i32 = arith.constant 0 : i32
    %c0_i32_0 = arith.constant 0 : i32
    return %c0_i32, %arg1 : i32, i32
  }
  func.func @transform_2(%arg0: i32, %arg1: i32) -> (i32, i32) {
    %c0_i32 = arith.constant 0 : i32
    %c0_i32_0 = arith.constant 0 : i32
    return %c0_i32, %arg1 : i32, i32
  }
  func.func @transform_3(%arg0: i32, %arg1: i32) -> (i32, i32) {
    %c0_i32 = arith.constant 0 : i32
    %c0_i32_0 = arith.constant 0 : i32
    return %arg1, %c0_i32 : i32, i32
  }
  func.func @transform_4(%arg0: i32, %arg1: i32) -> (i32, i32) {
    %c0_i32 = arith.constant 0 : i32
    %c0_i32_0 = arith.constant 0 : i32
    %c0_i32_1 = arith.constant 0 : i32
    return %c0_i32, %c0_i32_0 : i32, i32
  }
  func.func @transform_5(%arg0: i32, %arg1: i32) -> (i32, i32) {
    %c0_i32 = arith.constant 0 : i32
    %c0_i32_0 = arith.constant 0 : i32
    return %arg0, %c0_i32 : i32, i32
  }
}

</mosaic_0001>

<bundles_post_ra>
// kernel: tpu_custom_call.1
= control target key start
LH: loop header
LB: loop body
LE: loop exit
PB: predicated region body
PF: predicated region fallthrough
CT: control target
= control target key end

     0   :  { %s3503_s0 = inlined_call_operand.hbm [shape: bf16[16,384], index: 0, kind: input, shape index: {}]   ;;  %s3504_s1 = inlined_call_operand.hbm [shape: bf16[384,1536], index: 1, kind: input, shape index: {}]   ;;  %s3505_s2 = inlined_call_operand.hbm [shape: f32[1,1536], index: 2, kind: input, shape index: {}]   ;;  %s3506_s3 = inlined_call_operand.hbm [shape: bf16[1536,384], index: 3, kind: input, shape index: {}]   ;;  %s3507_s4 = inlined_call_operand.hbm [shape: f32[1,384], index: 4, kind: input, shape index: {}]   ;;  %s3508_s5 = inlined_call_operand.hbm [shape: f32[16,384], index: 5, kind: output, shape index: {}]  }
   0x1   :  { %3513 = sst [smem:[#allocation20_spill]] %s3504_s1 }
   0x2   :  { %3514 = sst [smem:[#allocation21_spill]] %s3507_s4 }
   0x3   :  { %10 = vsyncpa [#allocation4], 0 }
   0x4   :  { %11 = vsyncpa [#allocation7], 0 }
   0x5   :  { %13 = vsyncpa [#allocation7 + $0x1], 0 }
   0x6   :  { %14 = vsyncpa [#allocation10], 0 }
   0x7   :  { %16 = vsyncpa [#allocation10 + $0x1], 0 }
   0x8   :  { %17 = vsyncpa [#allocation5], 0  ;;  %s3094_s18 = smov 0   ;;  %s3096_s19 = smov 0  }
   0x9   :  { %s3098_s20 = smov 0   ;;  %s3100_s21 = smov 0  }
   0xa   :  { %s3102_s22 = smov 0   ;;  %s3104_s23 = smov 0  }
   0xb LB: > { %s3123_s24 = sadd.s32 4294967295, %s3048_s23   ;;  %s68_s25 = sadd.s32 1, %s3036_s20  ;;  %s3048_s23 = sphi %s3104_s23, %s23_s23   ;;  %s3044_s22 = sphi %s3102_s22, %s3535_s22   ;;  %s3040_s21 = sphi %s3100_s21, %s3534_s21   ;;  %s3036_s20 = sphi %s3098_s20, %s3533_s20   ;;  %s3032_s19 = sphi %s3096_s19, %s3532_s19   ;;  %s3028_s18 = sphi %s3094_s18, %s3531_s18  }
   0xc   : > { %p75_p0 = scmp.ne.s32.totalorder %s3036_s20, %s3032_s19  ;;  %p76_p1 = scmp.eq.s32.totalorder %s3048_s23, 0 }
   0xd   : > { %p81_p2 = scmp.ne.s32.totalorder %s3032_s19, %s3028_s18  ;;  %p3509_p3 = scmp.eq.s32.totalorder %s3123_s24, 0 }
   0xe   : > { %p77_p4 = por %p76_p1, %p75_p0  ;;  %p2178_p5 = scmp.ge.s32.totalorder %s3048_s23, 1 }
   0xf   : > { %p3134_p6 = por %p3509_p3, %p81_p2  ;;  %p191_p7 = scmp.lt.s32.totalorder %s3048_s23, 4 }
  0x10   : > { %s3050_s28 = smov [#allocation11]   ;;  %p2482_p10 = scmp.lt.s32.totalorder %s3048_s23, 3 }
  0x11   : > { %p3139_p8 = pnand %p2178_p5, %p191_p7  ;;  %s221_s29 = sshll.u32 %s3050_s28, 4  ;;  %s222_s29 = int_to_ptr.vmem [resolvable:$true] %s221_s29 }
  0x12   : > { %s3510_s30 = sand.u32 1, %s3048_s23   ;;  %p3153_p12 = pnand %p2482_p10, %p77_p4 }
  0x13   : > { %p2463_p9 = pneg %p3139_p8  ;;  %s2833_s8 = scalar_lea.vmem %s222_s29, 48 }
  0x14   : > { %p2834_p0 = scmp.ne.s32.totalorder %s222_s29, %s2833_s8  ;;  %s2840_s9 = scalar_lea.vmem %s222_s29, 64 }
  0x15   : > { %p3149_p11 = pnand %p2463_p9, %p3509_p3  ;;  %p2841_p5 = scmp.lt.s32.totalorder %s222_s29, %s222_s29 }
  0x16   : > { %p2842_p7 = scmp.lt.s32.totalorder %s2840_s9, %s2833_s8 }
  0x17   : > { %p2824_p13 = pneg %p3149_p11 }
  0x18   : > { %p2843_p9 = por %p2842_p7, %p2841_p5 }
  0x19   : > { %p2836_p1 = pnand %p2834_p0, %p2824_p13 }
  0x1b   : > { %p2837_p2 = pneg %p2836_p1 }
  0x1d   : > { %p2844_p3 = pnand %p2843_p9, %p2837_p2 }
  0x1f   : > { %2847 = shalt.err (!%p2844_p3)
}
  0x20   : > { %s3519_s4 = sld [smem:[#allocation21_spill]]  ;;  %s32_s12 = sadd.s32 1, %s3044_s22 }
  0x21   : > { %s3511_s13 = sand.u32 1, %s3036_s20   ;;  %p33_p4 = scmp.ge.s32.totalorder %s32_s12, 3 }
  0x22   : > { %s3171_s14 = smul.u32 768, %s3511_s13  ;;  %s2395_s15 = sshll.u32 %s3044_s22, 8 }
  0x23   : > { %s3537_s12 = smov (%p33_p4, %s32_s12), 0  ;;  %s3521_s1 = sld [smem:[#allocation20_spill]] }
  0x24   : > { %3520 = sst [smem:[#allocation18_spill]] %s3537_s12  ;;  %s65_s28 = ssub.s32 %s3044_s22, %s3537_s12 }
  0x25   : > { %s236_s8 = scalar_lea.vmem [#allocation6], %s3171_s14  ;;  %p66_p3 = scmp.eq.s32.totalorder %s65_s28, 0 }
  0x26   : > { %2469 = dma.hbm_to_vmem [thread:$0]  (!%p3149_p11), %s3519_s4, 48, %s222_s29, [#allocation10]  }
  0x27   : > { %s243_s29 = sshll.u32 %s236_s8, 4  ;;  %s3191_s10 = scalar_lea.sflag [#allocation7], %s3510_s30  ;;  %s244_s29 = int_to_ptr.vmem [resolvable:$true] %s243_s29 }
  0x28   : > { %s3187_s9 = scalar_select %p66_p3, %s3036_s20, %s68_s25  }
  0x29   : > { %s3179_s18 = scalar_lea.hbm %s3521_s1, %s2395_s15  ;;  %p2850_p10 = pneg %p3153_p12 }
  0x2a   : > { %3522 = sst [smem:[#allocation19_spill]] %s3187_s9  ;;  %s2861_s11 = scalar_lea.vmem %s244_s29, 12288 }
  0x2b   : > { %p2862_p0 = scmp.ne.s32.totalorder %s244_s29, %s2861_s11  ;;  %s3051_s15 = smov [#allocation6]  }
  0x2c   : > { %s2866_s16 = sshll.u32 %s3051_s15, 4  ;;  %s2867_s16 = int_to_ptr.vmem [resolvable:$false] %s2866_s16 }
  0x2d   : > { %p2864_p1 = pnand %p2862_p0, %p2850_p10  ;;  %s2868_s17 = scalar_lea.vmem %s2867_s16, 24576 }
  0x2e   : > { %p2869_p5 = scmp.lt.s32.totalorder %s244_s29, %s2867_s16  ;;  %p2870_p7 = scmp.lt.s32.totalorder %s2868_s17, %s2861_s11 }
  0x2f   : > { %p2865_p2 = pneg %p2864_p1 }
  0x30   : > { %p2871_p9 = por %p2870_p7, %p2869_p5 }
  0x32   : > { %p2872_p4 = pnand %p2871_p9, %p2865_p2 }
  0x34   : > { %2875 = shalt.err (!%p2872_p4)
}
  0x35   : > { %s3052_s25 = smov 768   ;;  %s3053_s28 = smov 256  }
  0x36   : > { %s3054_s8 = smov 16   ;;  %s3055_s30 = smov [#allocation3]  }
  0x37   : > { %2473 = dma.hbm_to_vmem [thread:$0]  (!%p3153_p12), %s3179_s18, 12288, %s244_s29, %s3191_s10, %s3052_s25, %s3053_s28, %s3054_s8  }
  0x38   : > { %s207_s13 = sshll.u32 %s3055_s30, 4  ;;  %s3523_s15 = sand.u32 1, %s3036_s20   ;;  %s208_s13 = int_to_ptr.vmem [resolvable:$true] %s207_s13 }
  0x39   : > { %s2184_s1 = sshll.u32 %s3523_s15, 2  ;;  %s2887_s16 = scalar_lea.vmem %s208_s13, 384 }
  0x3a   : > { %p2888_p3 = scmp.ne.s32.totalorder %s208_s13, %s2887_s16  ;;  %p2895_p2 = scmp.lt.s32.totalorder %s208_s13, %s208_s13 }
  0x3b   : > { %p2896_p5 = scmp.lt.s32.totalorder %s2887_s16, %s2887_s16 }
  0x3c   : > { %p2890_p0 = pnand %p2888_p3, %p2824_p13 }
  0x3d   : > { %p2897_p7 = por %p2896_p5, %p2895_p2 }
  0x3e   : > { %p2891_p1 = pneg %p2890_p0 }
  0x40   : > { %p2898_p9 = pnand %p2897_p7, %p2891_p1 }
  0x42   : > { %2901 = shalt.err (!%p2898_p9)
}
  0x43   : > { %s3056_s11 = smov 192   ;;  %s3057_s18 = smov 12  }
  0x44   : > { %2466 = dma.hbm_to_vmem [thread:$0]  (!%p3149_p11), %s3503_s0, 384, %s208_s13, [#allocation4], %s3056_s11, %s3056_s11, %s3057_s18  }
  0x45   : > { %s2396_s17 = sshll.u32 %s3044_s22, 6  ;;  %s257_s15 = scalar_lea.vmem [#allocation8], %s2184_s1 }
  0x46   : > { %s263_s8 = scalar_lea.hbm %s3505_s2, %s2396_s17  ;;  %s265_s16 = sshll.u32 %s257_s15, 4  ;;  %s266_s16 = int_to_ptr.vmem [resolvable:$true] %s265_s16 }
  0x47   : > { %s2915_s4 = scalar_lea.vmem %s266_s16, 64  ;;  %s3058_s6 = smov [#allocation8]  }
  0x48   : > { %p2916_p13 = scmp.ne.s32.totalorder %s266_s16, %s2915_s4  ;;  %s2920_s12 = sshll.u32 %s3058_s6, 4  ;;  %s2921_s12 = int_to_ptr.vmem [resolvable:$false] %s2920_s12 }
  0x49   : > { %s2922_s9 = scalar_lea.vmem %s2921_s12, 128  ;;  %p2923_p0 = scmp.lt.s32.totalorder %s266_s16, %s2921_s12 }
  0x4a   : > { %p2918_p4 = pnand %p2916_p13, %p2850_p10  ;;  %p2924_p11 = scmp.lt.s32.totalorder %s2922_s9, %s2915_s4 }
  0x4c   : > { %p2919_p3 = pneg %p2918_p4  ;;  %p2925_p1 = por %p2924_p11, %p2923_p0 }
  0x4e   : > { %p2926_p2 = pnand %p2925_p1, %p2919_p3 }
  0x50   : > { %2929 = shalt.err (!%p2926_p2)
}
  0x51   : > { %2476 = dma.hbm_to_vmem [thread:$0]  (!%p3153_p12), %s263_s8, 64, %s266_s16, %s3191_s10  }
  0x52   : > { %s2443_s1 = smul.u32 12288, %s3044_s22  ;;  %s276_s13 = scalar_lea.vmem [#allocation9], %s3171_s14 }
  0x53   : > { %s284_s30 = sshll.u32 %s276_s13, 4  ;;  %s3524_s4 = sand.u32 1, %s3048_s23   ;;  %s285_s30 = int_to_ptr.vmem [resolvable:$true] %s284_s30 }
  0x54   : > { %s283_s25 = scalar_lea.hbm %s3506_s3, %s2443_s1  ;;  %s273_s12 = scalar_lea.sflag [#allocation10], %s3524_s4 }
  0x55   : > { %s2943_s9 = scalar_lea.vmem %s285_s30, 12288  ;;  %s3059_s28 = smov [#allocation9]  }
  0x56   : > { %p2944_p5 = scmp.ne.s32.totalorder %s285_s30, %s2943_s9  ;;  %s2948_s15 = sshll.u32 %s3059_s28, 4  ;;  %s2949_s15 = int_to_ptr.vmem [resolvable:$false] %s2948_s15 }
  0x57   : > { %s2950_s10 = scalar_lea.vmem %s2949_s15, 24576  ;;  %p2951_p13 = scmp.lt.s32.totalorder %s285_s30, %s2949_s15 }
  0x58   : > { %p2946_p7 = pnand %p2944_p5, %p2850_p10  ;;  %p2952_p4 = scmp.lt.s32.totalorder %s2950_s10, %s2943_s9 }
  0x5a   : > { %p2947_p9 = pneg %p2946_p7  ;;  %p2953_p3 = por %p2952_p4, %p2951_p13 }
  0x5c   : > { %p2954_p0 = pnand %p2953_p3, %p2947_p9 }
  0x5e   : > { %2957 = shalt.err (!%p2954_p0)
}
  0x5f   : > { %2479 = dma.hbm_to_vmem [thread:$0]  (!%p3153_p12), %s283_s25, 12288, %s285_s30, %s273_s12, %s3056_s11, %s3056_s11, %s3057_s18  }
  0x60   : > { %296 = sbr.rel (%p3139_p8) target bundleno = 699 (0x2bb), region = 40  ;;  %p3525_p10 = scmp.eq.s32.totalorder (!%p3139_p8), %s3123_s24, 0 }
  0x65   : > { %3007 = dma.done.wait (%p3525_p10), [#allocation4], 384   ;;  %p3526_p11 = pmov %p3525_p10 }
  0x66   : > { %s302_s14 = sand.u32 1, %s3123_s24   ;;  %s304_s8 = sand.u32 1, %s3032_s19  }
  0x67   : > { %3009 = vsyncadd (%p3526_p11), [#allocation4], 4294966912  ;;  %s2444_s16 = smul.u32 768, %s304_s8  ;;  %s303_s7 = scalar_lea.sflag [#allocation7], %s302_s14 }
  0x69   : > { %s3248_s6 = scalar_lea.vmem [#allocation6], %s2444_s16 }
  0x6a   : > { %3011 = dma.done.wait (%p3134_p6), %s303_s7, 12352  }
  0x6b   : > { %3013 = vsyncadd (%p3134_p6), %s303_s7, 4294954944  ;;  %s3254_s27 = sshll.u32 %s304_s8, 2  ;;  %s321_s18 = scalar_lea.sflag [#allocation10], %s302_s14 }
  0x6c   : > { %s315_s11 = scalar_lea.vmem [#allocation8], %s3254_s27  ;;  %s3257_s1 = scalar_lea.vmem [#allocation9], %s2444_s16 }
  0x6d   : > { %3015 = dma.done.wait (%p3134_p6), %s321_s18, 12288  }
  0x6e   : > { %3017 = vsyncadd (%p3134_p6), %s321_s18, 4294955008  ;;  %p3527_p8 = pmov %p3525_p10 }
  0x70   : > { %3019 = dma.done.wait (%p3527_p8), [#allocation10], 48   ;;  %p3528_p12 = pmov %p3527_p8 }
  0x71   : > { %p2194_p1 = scmp.ne.s32.totalorder %s3040_s21, 0 }
  0x72   : > { %3021 = vsyncadd (%p3528_p12), [#allocation10], 4294967248 }
  0x73   : > { %369 = sbr.rel (%p2194_p1) target bundleno = 131 (0x83), region = 64 }
  0x78   : > { %v372_v0 = vlaneseq  ;;  %v370_v2 = vld [vmem:[#allocation11] sm:$0x7] }
  0x7a   : > { %v373_v1 = vshrl.u32 %v372_v0, 7 }
  0x7c   : > { %v374_v3 = vsub.s32 0, %v373_v1  ;;  %v378_v4 = vsub.s32 1, %v373_v1  ;;  %v382_v5 = vsub.s32 2, %v373_v1 }
  0x7e   : > { %v375_v6 = vrot.slane %v370_v2, %v374_v3  ;;  %v379_v7 = vrot.slane %v370_v2, %v378_v4  ;;  %v383_v8 = vrot.slane %v370_v2, %v382_v5 }
  0x80   : > { %387 = vst [vmem:[#allocation2 + $0x28] sm:$0xff] %v375_v6  ;;  %390 = vst [vmem:[#allocation2] sm:$0xff] %v375_v6 }
  0x81   : > { %388 = vst [vmem:[#allocation2 + $0x10] sm:$0xff] %v379_v7  ;;  %391 = vst [vmem:[#allocation2 + $0x18] sm:$0xff] %v379_v7 }
  0x82   : > { %389 = vst [vmem:[#allocation2 + $0x8] sm:$0xff] %v383_v8  ;;  %392 = vst [vmem:[#allocation2 + $0x20] sm:$0xff] %v383_v8 }
  0x83 PF: > { %v2546_v9 = vld [vmem:[%s3248_s6 + $0xe4] ss:$16 sps:$4 sm:$0xff]   ;;  %v3060_v11 = vmov 0   ;;  %v2550_v12 = vld [vmem:[%s3248_s6 + $0xe0] ss:$16 sps:$4 sm:$0xff]   ;;  %p2390_p6 = scmp.ne.s32.totalorder %s3040_s21, 2 }
  0x84   : > { %v2548_v10 = vld [vmem:[%s3248_s6 + $0x2e4] ss:$16 sps:$4 sm:$0xff]   ;;  %1086 = vmatprep.mubr.bf16.mxu1 %v3060_v11  ;;  %1011 = vmatprep.subr.bf16.mxu0 %v2546_v9  ;;  %v2551_v13 = vld [vmem:[%s3248_s6 + $0x2e0] ss:$16 sps:$4 sm:$0xff]   ;;  %v2599_v43 = vld [vmem:[%s3248_s6 + $0xec] ss:$16 sps:$4 sm:$0xff]  }
  0x85   : > { %1054 = vmatprep.subr.bf16.mxu1 %v2548_v10  ;;  %v2552_v14 = vld [vmem:[%s3248_s6 + $0xc4] ss:$16 sps:$4 sm:$0xff]   ;;  %1012 = vmatpush1.bf16.msra.mxu0 %v2550_v12  ;;  %v2556_v16 = vld [vmem:[%s3248_s6 + $0xc0] ss:$16 sps:$4 sm:$0xff]   ;;  %v2597_v45 = vld [vmem:[%s3248_s6 + $0xe8] ss:$16 sps:$4 sm:$0xff]  }
  0x86   : > { %1055 = vmatpush1.bf16.msra.mxu1 %v2551_v13  ;;  %v2554_v15 = vld [vmem:[%s3248_s6 + $0x2c4] ss:$16 sps:$4 sm:$0xff]   ;;  %1013 = vmatprep.subr.bf16.mxu0 %v2552_v14  ;;  %v2557_v17 = vld [vmem:[%s3248_s6 + $0x2c0] ss:$16 sps:$4 sm:$0xff]   ;;  %v2605_v48 = vld [vmem:[%s3248_s6 + $0xcc] ss:$16 sps:$4 sm:$0xff]  }
  0x87   : > { %1056 = vmatprep.subr.bf16.mxu1 %v2554_v15  ;;  %v2558_v18 = vld [vmem:[%s3248_s6 + $0xa4] ss:$16 sps:$4 sm:$0xff]   ;;  %v2562_v20 = vld [vmem:[%s3248_s6 + $0xa0] ss:$16 sps:$4 sm:$0xff]   ;;  %v2603_v49 = vld [vmem:[%s3248_s6 + $0xc8] ss:$16 sps:$4 sm:$0xff]  }
  0x88   : > { %v2560_v19 = vld [vmem:[%s3248_s6 + $0x2a4] ss:$16 sps:$4 sm:$0xff]   ;;  %v2563_v21 = vld [vmem:[%s3248_s6 + $0x2a0] ss:$16 sps:$4 sm:$0xff]   ;;  %v2611_v52 = vld [vmem:[%s3248_s6 + $0xac] ss:$16 sps:$4 sm:$0xff]  }
  0x89   : > { %1014 = vmatpush1.bf16.msra.mxu0 %v2556_v16  ;;  %v2564_v22 = vld [vmem:[%s3248_s6 + $0x84] ss:$16 sps:$4 sm:$0xff]   ;;  %v2568_v24 = vld [vmem:[%s3248_s6 + $0x80] ss:$16 sps:$4 sm:$0xff]   ;;  %v2609_v53 = vld [vmem:[%s3248_s6 + $0xa8] ss:$16 sps:$4 sm:$0xff]  }
  0x8a   : > { %1057 = vmatpush1.bf16.msra.mxu1 %v2557_v17  ;;  %1015 = vmatprep.subr.bf16.mxu0 %v2558_v18  ;;  %v2566_v23 = vld [vmem:[%s3248_s6 + $0x284] ss:$16 sps:$4 sm:$0xff]   ;;  %v2569_v25 = vld [vmem:[%s3248_s6 + $0x280] ss:$16 sps:$4 sm:$0xff]   ;;  %v2617_v56 = vld [vmem:[%s3248_s6 + $0x8c] ss:$16 sps:$4 sm:$0xff]  }
  0x8b   : > { %1058 = vmatprep.subr.bf16.mxu1 %v2560_v19  ;;  %v2570_v26 = vld [vmem:[%s3248_s6 + $0x64] ss:$16 sps:$4 sm:$0xff]   ;;  %v2574_v28 = vld [vmem:[%s3248_s6 + $0x60] ss:$16 sps:$4 sm:$0xff]   ;;  %v2615_v57 = vld [vmem:[%s3248_s6 + $0x88] ss:$16 sps:$4 sm:$0xff]  }
  0x8c   : > { %v2572_v27 = vld [vmem:[%s3248_s6 + $0x264] ss:$16 sps:$4 sm:$0xff]   ;;  %v2575_v29 = vld [vmem:[%s3248_s6 + $0x260] ss:$16 sps:$4 sm:$0xff]   ;;  %v2645_v60 = vld [vmem:[#allocation3 + $0x4] ss:$12 sps:$4 sm:$0xff]  }
  0x8d   : > { %1016 = vmatpush1.bf16.msra.mxu0 %v2562_v20  ;;  %v2576_v30 = vld [vmem:[%s3248_s6 + $0x44] ss:$16 sps:$4 sm:$0xff]   ;;  %v2580_v32 = vld [vmem:[%s3248_s6 + $0x40] ss:$16 sps:$4 sm:$0xff]   ;;  %v2623_v61 = vld [vmem:[%s3248_s6 + $0x6c] ss:$16 sps:$4 sm:$0xff]   ;;  %1043 = vmatprep.mubr.bf16.mxu0 %v2645_v60 }
  0x8e   : > { %1059 = vmatpush1.bf16.msra.mxu1 %v2563_v21  ;;  %1017 = vmatprep.subr.bf16.mxu0 %v2564_v22  ;;  %v2578_v31 = vld [vmem:[%s3248_s6 + $0x244] ss:$16 sps:$4 sm:$0xff]   ;;  %v2581_v33 = vld [vmem:[%s3248_s6 + $0x240] ss:$16 sps:$4 sm:$0xff]   ;;  %v2621_v62 = vld [vmem:[%s3248_s6 + $0x68] ss:$16 sps:$4 sm:$0xff]  }
  0x8f   : > { %1060 = vmatprep.subr.bf16.mxu1 %v2566_v23  ;;  %v2582_v34 = vld [vmem:[%s3248_s6 + $0x24] ss:$16 sps:$4 sm:$0xff]   ;;  %v2586_v36 = vld [vmem:[%s3248_s6 + $0x20] ss:$16 sps:$4 sm:$0xff]   ;;  %v2629_v1 = vld [vmem:[%s3248_s6 + $0x4c] ss:$16 sps:$4 sm:$0xff]  }
  0x90   : > { %v2584_v35 = vld [vmem:[%s3248_s6 + $0x224] ss:$16 sps:$4 sm:$0xff]   ;;  %v2587_v37 = vld [vmem:[%s3248_s6 + $0x220] ss:$16 sps:$4 sm:$0xff]   ;;  %v2627_v2 = vld [vmem:[%s3248_s6 + $0x48] ss:$16 sps:$4 sm:$0xff]  }
  0x91   : > { %1018 = vmatpush1.bf16.msra.mxu0 %v2568_v24  ;;  %v2588_v38 = vld [vmem:[%s3248_s6 + $0x4] ss:$16 sps:$4 sm:$0xff]   ;;  %v2592_v40 = vld [vmem:[%s3248_s6] ss:$16 sps:$4 sm:$0xff]   ;;  %v2635_v5 = vld [vmem:[%s3248_s6 + $0x2c] ss:$16 sps:$4 sm:$0xff]  }
  0x92   : > { %1061 = vmatpush1.bf16.msra.mxu1 %v2569_v25  ;;  %1019 = vmatprep.subr.bf16.mxu0 %v2570_v26  ;;  %v2590_v39 = vld [vmem:[%s3248_s6 + $0x204] ss:$16 sps:$4 sm:$0xff]   ;;  %v2593_v41 = vld [vmem:[%s3248_s6 + $0x200] ss:$16 sps:$4 sm:$0xff]   ;;  %v2633_v6 = vld [vmem:[%s3248_s6 + $0x28] ss:$16 sps:$4 sm:$0xff]  }
  0x93   : > { %1062 = vmatprep.subr.bf16.mxu1 %v2572_v27  ;;  %v2594_v42 = vld [vmem:[%s3248_s6 + $0x1e4] ss:$16 sps:$4 sm:$0xff]   ;;  %v3303_v44 = vld [vmem:[#allocation3 + $0x8] ss:$12 sps:$4 sm:$0xff]   ;;  %v2639_v10 = vld [vmem:[%s3248_s6 + $0x8] ss:$16 sps:$4 sm:$0xff]  }
  0x94   : > { %v2600_v46 = vld [vmem:[%s3248_s6 + $0x1e0] ss:$16 sps:$4 sm:$0xff]   ;;  %v2601_v47 = vld [vmem:[%s3248_s6 + $0x1c4] ss:$16 sps:$4 sm:$0xff]   ;;  %v2641_v9 = vld [vmem:[%s3248_s6 + $0xc] ss:$16 sps:$4 sm:$0xff]  }
  0x95   : > { %1020 = vmatpush1.bf16.msra.mxu0 %v2574_v28  ;;  %v2606_v50 = vld [vmem:[%s3248_s6 + $0x1c0] ss:$16 sps:$4 sm:$0xff]   ;;  %v2607_v51 = vld [vmem:[%s3248_s6 + $0x1a4] ss:$16 sps:$4 sm:$0xff]   ;;  %v2648_v13 = vld [vmem:[%s3248_s6 + $0x1ec] ss:$16 sps:$4 sm:$0xff]  }
  0x96   : > { %1063 = vmatpush1.bf16.msra.mxu1 %v2575_v29  ;;  %1021 = vmatprep.subr.bf16.mxu0 %v2576_v30  ;;  %v2612_v54 = vld [vmem:[%s3248_s6 + $0x1a0] ss:$16 sps:$4 sm:$0xff]   ;;  %v2613_v55 = vld [vmem:[%s3248_s6 + $0x184] ss:$16 sps:$4 sm:$0xff]   ;;  %v2651_v14 = vld [vmem:[%s3248_s6 + $0x2ec] ss:$16 sps:$4 sm:$0xff]  }
  0x97   : > { %1064 = vmatprep.subr.bf16.mxu1 %v2578_v31  ;;  %v2618_v58 = vld [vmem:[%s3248_s6 + $0x180] ss:$16 sps:$4 sm:$0xff]   ;;  %v2619_v59 = vld [vmem:[%s3248_s6 + $0x164] ss:$16 sps:$4 sm:$0xff]   ;;  %v2646_v16 = vld [vmem:[%s3248_s6 + $0x1e8] ss:$16 sps:$4 sm:$0xff]  }
  0x98   : > { %v2624_v63 = vld [vmem:[%s3248_s6 + $0x160] ss:$16 sps:$4 sm:$0xff]   ;;  %v2625_v0 = vld [vmem:[%s3248_s6 + $0x144] ss:$16 sps:$4 sm:$0xff]   ;;  %v2649_v17 = vld [vmem:[%s3248_s6 + $0x2e8] ss:$16 sps:$4 sm:$0xff]  }
  0x99   : > { %1022 = vmatpush1.bf16.msra.mxu0 %v2580_v32  ;;  %v2630_v3 = vld [vmem:[%s3248_s6 + $0x140] ss:$16 sps:$4 sm:$0xff]   ;;  %v2631_v4 = vld [vmem:[%s3248_s6 + $0x124] ss:$16 sps:$4 sm:$0xff]   ;;  %v2654_v18 = vld [vmem:[%s3248_s6 + $0x1cc] ss:$16 sps:$4 sm:$0xff]  }
  0x9a   : > { %1065 = vmatpush1.bf16.msra.mxu1 %v2581_v33  ;;  %1023 = vmatprep.subr.bf16.mxu0 %v2582_v34  ;;  %v2636_v7 = vld [vmem:[%s3248_s6 + $0x120] ss:$16 sps:$4 sm:$0xff]   ;;  %v2637_v8 = vld [vmem:[%s3248_s6 + $0x104] ss:$16 sps:$4 sm:$0xff]   ;;  %v2657_v19 = vld [vmem:[%s3248_s6 + $0x2cc] ss:$16 sps:$4 sm:$0xff]  }
  0x9b   : > { %1066 = vmatprep.subr.bf16.mxu1 %v2584_v35  ;;  %v2642_v12 = vld [vmem:[%s3248_s6 + $0x100] ss:$16 sps:$4 sm:$0xff]   ;;  %v3338_v15 = vld [vmem:[#allocation3] ss:$12 sps:$4 sm:$0xff]   ;;  %v2660_v22 = vld [vmem:[%s3248_s6 + $0x1ac] ss:$16 sps:$4 sm:$0xff]  }
  0x9c   : > { %v2652_v20 = vld [vmem:[%s3248_s6 + $0x1c8] ss:$16 sps:$4 sm:$0xff]   ;;  %v2663_v23 = vld [vmem:[%s3248_s6 + $0x2ac] ss:$16 sps:$4 sm:$0xff]  }
  0x9d   : > { %1024 = vmatpush1.bf16.msra.mxu0 %v2586_v36  ;;  %v2655_v21 = vld [vmem:[%s3248_s6 + $0x2c8] ss:$16 sps:$4 sm:$0xff]   ;;  %v2666_v26 = vld [vmem:[%s3248_s6 + $0x18c] ss:$16 sps:$4 sm:$0xff]  }
  0x9e   : > { %1067 = vmatpush1.bf16.msra.mxu1 %v2587_v37  ;;  %1025 = vmatprep.subr.bf16.mxu0 %v2588_v38  ;;  %v2658_v24 = vld [vmem:[%s3248_s6 + $0x1a8] ss:$16 sps:$4 sm:$0xff]   ;;  %v2669_v27 = vld [vmem:[%s3248_s6 + $0x28c] ss:$16 sps:$4 sm:$0xff]  }
  0x9f   : > { %1068 = vmatprep.subr.bf16.mxu1 %v2590_v39  ;;  %v2661_v25 = vld [vmem:[%s3248_s6 + $0x2a8] ss:$16 sps:$4 sm:$0xff]   ;;  %v2672_v30 = vld [vmem:[%s3248_s6 + $0x16c] ss:$16 sps:$4 sm:$0xff]  }
  0xa0   : > { %v2664_v28 = vld [vmem:[%s3248_s6 + $0x188] ss:$16 sps:$4 sm:$0xff]   ;;  %v2675_v31 = vld [vmem:[%s3248_s6 + $0x26c] ss:$16 sps:$4 sm:$0xff]  }
  0xa1   : > { %1026 = vmatpush1.bf16.msra.mxu0 %v2592_v40  ;;  %v2667_v29 = vld [vmem:[%s3248_s6 + $0x288] ss:$16 sps:$4 sm:$0xff]   ;;  %v2678_v33 = vld [vmem:[%s3248_s6 + $0x14c] ss:$16 sps:$4 sm:$0xff]  }
  0xa2   : > { %1069 = vmatpush1.bf16.msra.mxu1 %v2593_v41  ;;  %1027 = vmatprep.subr.bf16.mxu0 %v2594_v42  ;;  %v2673_v32 = vld [vmem:[%s3248_s6 + $0x268] ss:$16 sps:$4 sm:$0xff]   ;;  %v2681_v34 = vld [vmem:[%s3248_s6 + $0x24c] ss:$16 sps:$4 sm:$0xff]  }
  0xa3   : > { %1097 = vmatprep.subr.bf16.mxu1 %v2599_v43  ;;  %v2676_v35 = vld [vmem:[%s3248_s6 + $0x148] ss:$16 sps:$4 sm:$0xff]   ;;  %v2684_v37 = vld [vmem:[%s3248_s6 + $0x12c] ss:$16 sps:$4 sm:$0xff]  }
  0xa4   : > { %v2679_v36 = vld [vmem:[%s3248_s6 + $0x248] ss:$16 sps:$4 sm:$0xff]   ;;  %v2687_v38 = vld [vmem:[%s3248_s6 + $0x22c] ss:$16 sps:$4 sm:$0xff]  }
  0xa5   : > { %1087 = vmatmul.mubr.bf16.vlgmr.msra.gmra.mxu1 %v3303_v44  ;;  %1028 = vmatpush2.bf16.msra.mxu0 %v2600_v46  ;;  %v2682_v39 = vld [vmem:[%s3248_s6 + $0x128] ss:$16 sps:$4 sm:$0xff]   ;;  %v2690_v41 = vld [vmem:[%s3248_s6 + $0x10c] ss:$16 sps:$4 sm:$0xff]   ;;  %v2696_v46 = vld [vmem:[%s3257_s1 + $0xac] ss:$12 sps:$4 sm:$0xff]  }
  0xa6   : > { %1098 = vmatpush1.bf16.msra.mxu1 %v2597_v45  ;;  %1029 = vmatprep.subr.bf16.mxu0 %v2601_v47  ;;  %v2685_v40 = vld [vmem:[%s3248_s6 + $0x228] ss:$16 sps:$4 sm:$0xff]   ;;  %v2693_v42 = vld [vmem:[%s3248_s6 + $0x20c] ss:$16 sps:$4 sm:$0xff]  }
  0xa7   : > { %1099 = vmatprep.subr.bf16.mxu1 %v2605_v48  ;;  %1129 = vmatprep.mubr.bf16.mxu1 %v2645_v60  ;;  %v2688_v43 = vld [vmem:[%s3248_s6 + $0x108] ss:$16 sps:$4 sm:$0xff]   ;;  %v2694_v47 = vld [vmem:[%s3257_s1 + $0xa8] ss:$12 sps:$4 sm:$0xff]  }
  0xa8   : > { %v2691_v45 = vld [vmem:[%s3248_s6 + $0x208] ss:$16 sps:$4 sm:$0xff]  }
  0xa9   : > { %1030 = vmatpush2.bf16.msra.mxu0 %v2606_v50  ;;  %v2699_v48 = vld [vmem:[%s3257_s1 + $0x94] ss:$12 sps:$4 sm:$0xff]   ;;  %v2702_v50 = vld [vmem:[%s3257_s1 + $0x7c] ss:$12 sps:$4 sm:$0xff]  }
  0xaa   : > { %1100 = vmatpush1.bf16.msra.mxu1 %v2603_v49  ;;  %1031 = vmatprep.subr.bf16.mxu0 %v2607_v51  ;;  %v2697_v49 = vld [vmem:[%s3257_s1 + $0x90] ss:$12 sps:$4 sm:$0xff]   ;;  %v2700_v51 = vld [vmem:[%s3257_s1 + $0x78] ss:$12 sps:$4 sm:$0xff]   ;;  %v2711_v60 = vld [vmem:[%s3257_s1 + $0x34] ss:$12 sps:$4 sm:$0xff]  }
  0xab   : > { %1101 = vmatprep.subr.bf16.mxu1 %v2611_v52  ;;  %v2705_v52 = vld [vmem:[%s3257_s1 + $0x64] ss:$12 sps:$4 sm:$0xff]  }
  0xad   : > { %1032 = vmatpush2.bf16.msra.mxu0 %v2612_v54  ;;  %v2723_v54 = vld [vmem:[%s3257_s1 + $0x22c] ss:$12 sps:$4 sm:$0xff]  }
  0xae   : > { %1102 = vmatpush1.bf16.msra.mxu1 %v2609_v53  ;;  %1033 = vmatprep.subr.bf16.mxu0 %v2613_v55  ;;  %v2721_v53 = vld [vmem:[%s3257_s1 + $0x228] ss:$12 sps:$4 sm:$0xff]   ;;  %v2703_v55 = vld [vmem:[%s3257_s1 + $0x60] ss:$12 sps:$4 sm:$0xff]  }
  0xaf   : > { %1103 = vmatprep.subr.bf16.mxu1 %v2617_v56  ;;  %v2708_v56 = vld [vmem:[%s3257_s1 + $0x4c] ss:$12 sps:$4 sm:$0xff]  }
  0xb1   : > { %1034 = vmatpush2.bf16.msra.mxu0 %v2618_v58  ;;  %v2735_v58 = vld [vmem:[%s3257_s1 + $0x1fc] ss:$12 sps:$4 sm:$0xff]  }
  0xb2   : > { %1104 = vmatpush1.bf16.msra.mxu1 %v2615_v57  ;;  %1035 = vmatprep.subr.bf16.mxu0 %v2619_v59  ;;  %v2727_v57 = vld [vmem:[%s3257_s1 + $0x210] ss:$12 sps:$4 sm:$0xff]   ;;  %v2706_v59 = vld [vmem:[%s3257_s1 + $0x48] ss:$12 sps:$4 sm:$0xff]  }
  0xb3   : > { %1105 = vmatprep.subr.bf16.mxu1 %v2623_v61  ;;  %v2733_v61 = vld [vmem:[%s3257_s1 + $0x1f8] ss:$12 sps:$4 sm:$0xff]  }
  0xb5   : > { %1036 = vmatpush2.bf16.msra.mxu0 %v2624_v63  ;;  %v2714_v63 = vld [vmem:[%s3257_s1 + $0x1c] ss:$12 sps:$4 sm:$0xff]  }
  0xb6   : > { %1106 = vmatpush1.bf16.msra.mxu1 %v2621_v62  ;;  %1037 = vmatprep.subr.bf16.mxu0 %v2625_v0  ;;  %v2709_v62 = vld [vmem:[%s3257_s1 + $0x30] ss:$12 sps:$4 sm:$0xff]  }
  0xb7   : > { %1107 = vmatprep.subr.bf16.mxu1 %v2629_v1  ;;  %v2741_v0 = vld [vmem:[%s3257_s1 + $0x1e4] ss:$12 sps:$4 sm:$0xff]   ;;  %v2739_v1 = vld [vmem:[%s3257_s1 + $0x1e0] ss:$12 sps:$4 sm:$0xff]  }
  0xb9   : > { %1038 = vmatpush2.bf16.msra.mxu0 %v2630_v3  ;;  %v2712_v3 = vld [vmem:[%s3257_s1 + $0x18] ss:$12 sps:$4 sm:$0xff]  }
  0xba   : > { %1108 = vmatpush1.bf16.msra.mxu1 %v2627_v2  ;;  %1039 = vmatprep.subr.bf16.mxu0 %v2631_v4  ;;  %v2747_v2 = vld [vmem:[%s3257_s1 + $0x1cc] ss:$12 sps:$4 sm:$0xff]   ;;  %v2717_v4 = vld [vmem:[%s3257_s1 + $0x4] ss:$12 sps:$4 sm:$0xff]  }
  0xbb   : > { %1109 = vmatprep.subr.bf16.mxu1 %v2635_v5  ;;  %v2745_v5 = vld [vmem:[%s3257_s1 + $0x1c8] ss:$12 sps:$4 sm:$0xff]  }
  0xbd   : > { %1040 = vmatpush2.bf16.msra.mxu0 %v2636_v7  ;;  %v2720_v7 = vld [vmem:[%s3257_s1 + $0x16c] ss:$12 sps:$4 sm:$0xff]  }
  0xbe   : > { %1110 = vmatpush1.bf16.msra.mxu1 %v2633_v6  ;;  %1041 = vmatprep.subr.bf16.mxu0 %v2637_v8  ;;  %v2715_v6 = vld [vmem:[%s3257_s1] ss:$12 sps:$4 sm:$0xff]   ;;  %v2718_v8 = vld [vmem:[%s3257_s1 + $0x168] ss:$12 sps:$4 sm:$0xff]  }
  0xbf   : > { %1111 = vmatprep.subr.bf16.mxu1 %v2641_v9  ;;  %v2726_v9 = vld [vmem:[%s3257_s1 + $0x154] ss:$12 sps:$4 sm:$0xff]  }
  0xc1   : > { %1042 = vmatpush2.bf16.msra.mxu0 %v2642_v12  ;;  %v2753_v12 = vld [vmem:[%s3257_s1 + $0x1b4] ss:$12 sps:$4 sm:$0xff]  }
  0xc2   : > { %1112 = vmatpush1.bf16.msra.mxu1 %v2639_v10  ;;  %1140 = vmatprep.subr.bf16.mxu0 %v2651_v14  ;;  %v2724_v10 = vld [vmem:[%s3257_s1 + $0x150] ss:$12 sps:$4 sm:$0xff]  }
  0xc3   : > { %1113 = vmatprep.subr.bf16.mxu1 %v2648_v13  ;;  %v2732_v13 = vld [vmem:[%s3257_s1 + $0x13c] ss:$12 sps:$4 sm:$0xff]  }
  0xc4   : > { %1044 = vmatmul.mubr.bf16.vlgmr.msra.gmra.mxu0 %v3338_v15  ;;  %v2751_v14 = vld [vmem:[%s3257_s1 + $0x1b0] ss:$12 sps:$4 sm:$0xff]  }
  0xc5   : > { %1141 = vmatpush1.bf16.msra.mxu0 %v2649_v17  ;;  %1172 = vmatprep.mubr.bf16.mxu0 %v3060_v11  ;;  %v2670_v11 = vld [vmem:[%s3248_s6 + $0x168] ss:$16 sps:$4 sm:$0xff]  }
  0xc6   : > { %1114 = vmatpush2.bf16.msra.mxu1 %v2646_v16  ;;  %1142 = vmatprep.subr.bf16.mxu0 %v2657_v19  ;;  %v2759_v16 = vld [vmem:[%s3257_s1 + $0x19c] ss:$12 sps:$4 sm:$0xff]   ;;  %v2738_v17 = vld [vmem:[%s3257_s1 + $0x124] ss:$12 sps:$4 sm:$0xff]   ;;  %v2736_v19 = vld [vmem:[%s3257_s1 + $0x120] ss:$12 sps:$4 sm:$0xff]  }
  0xc7   : > { %1115 = vmatprep.subr.bf16.mxu1 %v2654_v18  ;;  %v2757_v18 = vld [vmem:[%s3257_s1 + $0x198] ss:$12 sps:$4 sm:$0xff]  }
  0xc9   : > { %1143 = vmatpush1.bf16.msra.mxu0 %v2655_v21  ;;  %v2744_v21 = vld [vmem:[%s3257_s1 + $0x10c] ss:$12 sps:$4 sm:$0xff]  }
  0xca   : > { %1116 = vmatpush2.bf16.msra.mxu1 %v2652_v20  ;;  %1144 = vmatprep.subr.bf16.mxu0 %v2663_v23  ;;  %v2765_v20 = vld [vmem:[%s3257_s1 + $0x184] ss:$12 sps:$4 sm:$0xff]   ;;  %v2742_v23 = vld [vmem:[%s3257_s1 + $0x108] ss:$12 sps:$4 sm:$0xff]  }
  0xcb   : > { %1117 = vmatprep.subr.bf16.mxu1 %v2660_v22  ;;  %v2763_v22 = vld [vmem:[%s3257_s1 + $0x180] ss:$12 sps:$4 sm:$0xff]  }
  0xcd   : > { %1145 = vmatpush1.bf16.msra.mxu0 %v2661_v25  ;;  %v2750_v25 = vld [vmem:[%s3257_s1 + $0xf4] ss:$12 sps:$4 sm:$0xff]  }
  0xce   : > { %1118 = vmatpush2.bf16.msra.mxu1 %v2658_v24  ;;  %1146 = vmatprep.subr.bf16.mxu0 %v2669_v27  ;;  %v2768_v24 = vld [vmem:[%s3257_s1 + $0x2ec] ss:$12 sps:$4 sm:$0xff]   ;;  %v2748_v27 = vld [vmem:[%s3257_s1 + $0xf0] ss:$12 sps:$4 sm:$0xff]  }
  0xcf   : > { %1119 = vmatprep.subr.bf16.mxu1 %v2666_v26  ;;  %v2766_v26 = vld [vmem:[%s3257_s1 + $0x2e8] ss:$12 sps:$4 sm:$0xff]  }
  0xd1   : > { %1147 = vmatpush1.bf16.msra.mxu0 %v2667_v29  ;;  %v2773_v29 = vld [vmem:[%s3257_s1 + $0x2d4] ss:$12 sps:$4 sm:$0xff]  }
  0xd2   : > { %1120 = vmatpush2.bf16.msra.mxu1 %v2664_v28  ;;  %1148 = vmatprep.subr.bf16.mxu0 %v2675_v31  ;;  %v2771_v28 = vld [vmem:[%s3257_s1 + $0x2d0] ss:$12 sps:$4 sm:$0xff]   ;;  %v2754_v31 = vld [vmem:[%s3257_s1 + $0xd8] ss:$12 sps:$4 sm:$0xff]  }
  0xd3   : > { %1121 = vmatprep.subr.bf16.mxu1 %v2672_v30  ;;  %v2756_v30 = vld [vmem:[%s3257_s1 + $0xdc] ss:$12 sps:$4 sm:$0xff]  }
  0xd5   : > { %1149 = vmatpush1.bf16.msra.mxu0 %v2673_v32  ;;  %v2778_v32 = vld [vmem:[%s3257_s1 + $0x2bc] ss:$12 sps:$4 sm:$0xff]  }
  0xd6   : > { %1122 = vmatpush2.bf16.msra.mxu1 %v2670_v11  ;;  %1150 = vmatprep.subr.bf16.mxu0 %v2681_v34  ;;  %v2776_v11 = vld [vmem:[%s3257_s1 + $0x2b8] ss:$12 sps:$4 sm:$0xff]   ;;  %v2760_v34 = vld [vmem:[%s3257_s1 + $0xc0] ss:$12 sps:$4 sm:$0xff]  }
  0xd7   : > { %1123 = vmatprep.subr.bf16.mxu1 %v2678_v33  ;;  %v2762_v33 = vld [vmem:[%s3257_s1 + $0xc4] ss:$12 sps:$4 sm:$0xff]  }
  0xd9   : > { %1151 = vmatpush1.bf16.msra.mxu0 %v2679_v36  ;;  %v2783_v36 = vld [vmem:[%s3257_s1 + $0x2a4] ss:$12 sps:$4 sm:$0xff]  }
  0xda   : > { %1124 = vmatpush2.bf16.msra.mxu1 %v2676_v35  ;;  %1152 = vmatprep.subr.bf16.mxu0 %v2687_v38  ;;  %v2781_v35 = vld [vmem:[%s3257_s1 + $0x2a0] ss:$12 sps:$4 sm:$0xff]   ;;  %v2786_v38 = vld [vmem:[%s3257_s1 + $0x288] ss:$12 sps:$4 sm:$0xff]  }
  0xdb   : > { %1125 = vmatprep.subr.bf16.mxu1 %v2684_v37  ;;  %v2769_v37 = vld [vmem:[%s3257_s1 + $0x170] ss:$12 sps:$4 sm:$0xff]  }
  0xdd   : > { %1153 = vmatpush1.bf16.msra.mxu0 %v2685_v40  ;;  %v2793_v40 = vld [vmem:[%s3257_s1 + $0x274] ss:$12 sps:$4 sm:$0xff]  }
  0xde   : > { %1126 = vmatpush2.bf16.msra.mxu1 %v2682_v39  ;;  %1154 = vmatprep.subr.bf16.mxu0 %v2693_v42  ;;  %v2788_v39 = vld [vmem:[%s3257_s1 + $0x28c] ss:$12 sps:$4 sm:$0xff]   ;;  %v2798_v42 = vld [vmem:[%s3257_s1 + $0x25c] ss:$12 sps:$4 sm:$0xff]  }
  0xdf   : > { %1127 = vmatprep.subr.bf16.mxu1 %v2690_v41  ;;  %v2791_v41 = vld [vmem:[%s3257_s1 + $0x270] ss:$12 sps:$4 sm:$0xff]  }
  0xe1   : > { %1155 = vmatpush1.bf16.msra.mxu0 %v2691_v45  ;;  %v2803_v45 = vld [vmem:[%s3257_s1 + $0x244] ss:$12 sps:$4 sm:$0xff]  }
  0xe2   : > { %1128 = vmatpush2.bf16.msra.mxu1 %v2688_v43  ;;  %1841 = vmatprep.subr.bf16.mxu0 %v2696_v46  ;;  %v2796_v43 = vld [vmem:[%s3257_s1 + $0x258] ss:$12 sps:$4 sm:$0xff]   ;;  %v2801_v46 = vld [vmem:[%s3257_s1 + $0x240] ss:$12 sps:$4 sm:$0xff]  }
  0xe3   : > { %1884 = vmatprep.subr.bf16.mxu1 %v2723_v54 }
  0xe4   : > { %1173 = vmatmul.mubr.bf16.vlgmr.msra.gmra.mxu0 %v3303_v44  ;;  %v2729_v44 = vld [vmem:[%s3257_s1 + $0x214] ss:$12 sps:$4 sm:$0xff]  }
  0xe5   : > { %1130 = vmatmul.mubr.bf16.vlgmr.msra.gmra.mxu1 %v3338_v15  ;;  %1842 = vmatpush1.bf16.msra.mxu0 %v2694_v47  ;;  %v2730_v15 = vld [vmem:[%s3257_s1 + $0x138] ss:$12 sps:$4 sm:$0xff]   ;;  %v2806_v47 = vld [vmem:[%s3257_s1 + $0x2f0] ss:$12 sps:$4 sm:$0xff]  }
  0xe6   : > { %1843 = vmatprep.subr.bf16.mxu0 %v2699_v48  ;;  %1885 = vmatpush1.bf16.msra.mxu1 %v2721_v53  ;;  %v495_v48 = vlaneseq  ;;  %v493_v53 = vld [vmem:[%s315_s11] sm:$0xf] }
  0xe7   : > { %1886 = vmatprep.subr.bf16.mxu1 %v2729_v44 }
  0xe9   : > { %1844 = vmatpush1.bf16.msra.mxu0 %v2697_v49  ;;  %v496_v49 = vshrl.u32 %v495_v48, 7 }
  0xea   : > { %1845 = vmatprep.subr.bf16.mxu0 %v2702_v50  ;;  %1887 = vmatpush1.bf16.msra.mxu1 %v2727_v57 }
  0xeb   : > { %1888 = vmatprep.subr.bf16.mxu1 %v2735_v58  ;;  %v501_v50 = vsub.s32 1, %v496_v49 }
  0xed   : > { %1846 = vmatpush1.bf16.msra.mxu0 %v2700_v51  ;;  %v502_v54 = vrot.slane %v493_v53, %v501_v50 }
  0xee   : > { %1847 = vmatprep.subr.bf16.mxu0 %v2705_v52  ;;  %1889 = vmatpush1.bf16.msra.mxu1 %v2733_v61  ;;  %v497_v52 = vsub.s32 0, %v496_v49 }
  0xef   : > { %1890 = vmatprep.subr.bf16.mxu1 %v2741_v0 }
  0xf0   : > { %v498_v44 = vrot.slane %v493_v53, %v497_v52 }
  0xf1   : > { %1848 = vmatpush1.bf16.msra.mxu0 %v2703_v55 }
  0xf2   : > { %1849 = vmatprep.subr.bf16.mxu0 %v2708_v56  ;;  %1891 = vmatpush1.bf16.msra.mxu1 %v2739_v1 }
  0xf3   : > { %1892 = vmatprep.subr.bf16.mxu1 %v2747_v2 }
  0xf5   : > { %1850 = vmatpush1.bf16.msra.mxu0 %v2706_v59 }
  0xf6   : > { %1851 = vmatprep.subr.bf16.mxu0 %v2711_v60  ;;  %1893 = vmatpush1.bf16.msra.mxu1 %v2745_v5 }
  0xf7   : > { %1894 = vmatprep.subr.bf16.mxu1 %v2753_v12  ;;  %v2770_v12 = vld [vmem:[%s3257_s1 + $0xb0] ss:$12 sps:$4 sm:$0xff]  }
  0xf9   : > { %1852 = vmatpush1.bf16.msra.mxu0 %v2709_v62 }
  0xfa   : > { %1853 = vmatprep.subr.bf16.mxu0 %v2714_v63  ;;  %1895 = vmatpush1.bf16.msra.mxu1 %v2751_v14  ;;  %v2774_v14 = vld [vmem:[%s3257_s1 + $0x158] ss:$12 sps:$4 sm:$0xff]  }
  0xfb   : > { %1896 = vmatprep.subr.bf16.mxu1 %v2759_v16  ;;  %v2779_v16 = vld [vmem:[%s3257_s1 + $0x140] ss:$12 sps:$4 sm:$0xff]  }
  0xfd   : > { %1854 = vmatpush1.bf16.msra.mxu0 %v2712_v3 }
  0xfe   : > { %1855 = vmatprep.subr.bf16.mxu0 %v2717_v4  ;;  %1897 = vmatpush1.bf16.msra.mxu1 %v2757_v18  ;;  %v2784_v18 = vld [vmem:[%s3257_s1 + $0x128] ss:$12 sps:$4 sm:$0xff]  }
  0xff   : > { %1898 = vmatprep.subr.bf16.mxu1 %v2765_v20  ;;  %v2789_v20 = vld [vmem:[%s3257_s1 + $0x110] ss:$12 sps:$4 sm:$0xff]  }
 0x101   : > { %1856 = vmatpush1.bf16.msra.mxu0 %v2715_v6 }
 0x102   : > { %1857 = vmatprep.subr.bf16.mxu0 %v2720_v7  ;;  %1899 = vmatpush1.bf16.msra.mxu1 %v2763_v22  ;;  %v505_v22 = vsub.s32 2, %v496_v49 }
 0x103   : > { %1900 = vmatprep.subr.bf16.mxu1 %v2768_v24  ;;  %v2794_v24 = vld [vmem:[%s3257_s1 + $0xf8] ss:$12 sps:$4 sm:$0xff]  }
 0x105   : > { %1858 = vmatpush2.bf16.msra.mxu0 %v2718_v8 }
 0x106   : > { %1859 = vmatprep.subr.bf16.mxu0 %v2726_v9  ;;  %1901 = vmatpush2.bf16.msra.mxu1 %v2766_v26  ;;  %v506_v26 = vrot.slane %v493_v53, %v505_v22 }
 0x107   : > { %1902 = vmatprep.subr.bf16.mxu1 %v2773_v29  ;;  %v2795_v29 = vld [vmem:[%s3257_s1 + $0x38] ss:$12 sps:$4 sm:$0xff]  }
 0x109   : > { %1860 = vmatpush2.bf16.msra.mxu0 %v2724_v10 }
 0x10a   : > { %1861 = vmatprep.subr.bf16.mxu0 %v2732_v13  ;;  %1903 = vmatpush2.bf16.msra.mxu1 %v2771_v28 }
 0x10b   : > { %1904 = vmatprep.subr.bf16.mxu1 %v2778_v32 }
 0x10d   : > { %1862 = vmatpush2.bf16.msra.mxu0 %v2730_v15  ;;  %v2775_v15 = vld [vmem:[%s3257_s1 + $0x98] ss:$12 sps:$4 sm:$0xff]  }
 0x10e   : > { %1863 = vmatprep.subr.bf16.mxu0 %v2738_v17  ;;  %1905 = vmatpush2.bf16.msra.mxu1 %v2776_v11  ;;  %v2780_v17 = vld [vmem:[%s3257_s1 + $0x80] ss:$12 sps:$4 sm:$0xff]  }
 0x10f   : > { %1906 = vmatprep.subr.bf16.mxu1 %v2783_v36  ;;  %v2799_v11 = vld [vmem:[%s3257_s1 + $0xe0] ss:$12 sps:$4 sm:$0xff]  }
 0x111   : > { %1864 = vmatpush2.bf16.msra.mxu0 %v2736_v19  ;;  %v2785_v19 = vld [vmem:[%s3257_s1 + $0x68] ss:$12 sps:$4 sm:$0xff]  }
 0x112   : > { %1865 = vmatprep.subr.bf16.mxu0 %v2744_v21  ;;  %1907 = vmatpush2.bf16.msra.mxu1 %v2781_v35  ;;  %v509_v21 = vsub.s32 3, %v496_v49 }
 0x113   : > { %1908 = vmatprep.subr.bf16.mxu1 %v2788_v39  ;;  %v2804_v39 = vld [vmem:[%s3257_s1 + $0xc8] ss:$12 sps:$4 sm:$0xff]  }
 0x115   : > { %1866 = vmatpush2.bf16.msra.mxu0 %v2742_v23  ;;  %v2790_v23 = vld [vmem:[%s3257_s1 + $0x50] ss:$12 sps:$4 sm:$0xff]  }
 0x116   : > { %1867 = vmatprep.subr.bf16.mxu0 %v2750_v25  ;;  %1909 = vmatpush2.bf16.msra.mxu1 %v2786_v38  ;;  %v510_v25 = vrot.slane %v493_v53, %v509_v21  ;;  %v2807_v53 = vld [vmem:[%s3257_s1 + $0x230] ss:$12 sps:$4 sm:$0xff]  }
 0x117   : > { %1910 = vmatprep.subr.bf16.mxu1 %v2793_v40 }
 0x119   : > { %1868 = vmatpush2.bf16.msra.mxu0 %v2748_v27 }
 0x11a   : > { %1869 = vmatprep.subr.bf16.mxu0 %v2756_v30  ;;  %1911 = vmatpush2.bf16.msra.mxu1 %v2791_v41 }
 0x11b   : > { %1912 = vmatprep.subr.bf16.mxu1 %v2798_v42 }
 0x11d   : > { %1870 = vmatpush2.bf16.msra.mxu0 %v2754_v31 }
 0x11e   : > { %1871 = vmatprep.subr.bf16.mxu0 %v2762_v33  ;;  %1913 = vmatpush2.bf16.msra.mxu1 %v2796_v43 }
 0x11f   : > { %1914 = vmatprep.subr.bf16.mxu1 %v2803_v45 }
 0x121   : > { %1872 = vmatpush2.bf16.msra.mxu0 %v2760_v34 }
 0x122   : > { %2397 = vmatprep.subr.bf16.mxu0 %v2769_v37  ;;  %1915 = vmatpush2.bf16.msra.mxu1 %v2801_v46  ;;  %v2800_v37 = vld [vmem:[%s3257_s1 + $0x20] ss:$12 sps:$4 sm:$0xff]  }
 0x123   : > { %2419 = vmatprep.subr.bf16.mxu1 %v2806_v47  ;;  %v2805_v47 = vld [vmem:[%s3257_s1 + $0x8] ss:$12 sps:$4 sm:$0xff]  }
 0x165   : > { %v1088_v51 = vpop.f32.mrf.mxu1 }
 0x167   : > { %v1090_v55 = vpop.f32.mrf.mxu1 }
 0x169   : > { %v1092_v59 = vpop.f32.mrf.mxu1 }
 0x16b   : > { %v1094_v3 = vpop.f32.mrf.mxu1 }
 0x184   : > { %v1045_v56 = vpop.f32.mrf.mxu0 }
 0x185   : > { %v1046_v60 = vadd.f32 %v1045_v56, %v498_v44  ;;  %v2810_v56 = vld [vmem:[%s3257_s1 + $0x2c0] ss:$12 sps:$4 sm:$0xff]  }
 0x186   : > { %v1047_v57 = vpop.f32.mrf.mxu0 }
 0x187   : > { %v1048_v58 = vadd.f32 %v1047_v57, %v502_v54  ;;  %v1089_v4 = vadd.f32 %v1088_v51, %v1046_v60  ;;  %v2811_v57 = vld [vmem:[%s3257_s1 + $0x200] ss:$12 sps:$4 sm:$0xff]   ;;  %v2814_v60 = vld [vmem:[%s3257_s1 + $0x290] ss:$12 sps:$4 sm:$0xff]  }
 0x188   : > { %v1049_v61 = vpop.f32.mrf.mxu0 }
 0x189   : > { %v1050_v62 = vadd.f32 %v1049_v61, %v498_v44  ;;  %v1091_v0 = vadd.f32 %v1090_v55, %v1048_v58  ;;  %v1183_v9 = vmax.f32 %v1089_v4, 0.0  ;;  %v2808_v55 = vld [vmem:[%s3257_s1 + $0x2d8] ss:$12 sps:$4 sm:$0xff]   ;;  %v2812_v58 = vld [vmem:[%s3257_s1 + $0x2a8] ss:$12 sps:$4 sm:$0xff]  }
 0x18a   : > { %v1051_v63 = vpop.f32.mrf.mxu0  ;;  %v2809_v44 = vld [vmem:[%s3257_s1 + $0x218] ss:$12 sps:$4 sm:$0xff]   ;;  %v2815_v61 = vld [vmem:[%s3257_s1 + $0x1d0] ss:$12 sps:$4 sm:$0xff]  }
 0x18b   : > { %v1093_v1 = vadd.f32 %v1092_v59, %v1050_v62  ;;  %v1052_v2 = vadd.f32 %v1051_v63, %v502_v54  ;;  %v1184_v7 = vmax.f32 %v1091_v0, 0.0  ;;  %v2813_v59 = vld [vmem:[%s3257_s1 + $0x1e8] ss:$12 sps:$4 sm:$0xff]   ;;  %v2816_v62 = vld [vmem:[%s3257_s1 + $0x278] ss:$12 sps:$4 sm:$0xff]  }
 0x18c   : > { %v2817_v63 = vld [vmem:[%s3257_s1 + $0x1b8] ss:$12 sps:$4 sm:$0xff]   ;;  %v2818_v0 = vld [vmem:[%s3257_s1 + $0x260] ss:$12 sps:$4 sm:$0xff]  }
 0x18d   : > { %v1095_v5 = vadd.f32 %v1094_v3, %v1052_v2  ;;  %v1187_v6 = vmax.f32 %v1093_v1, 0.0  ;;  %v2819_v1 = vld [vmem:[%s3257_s1 + $0x1a0] ss:$12 sps:$4 sm:$0xff]   ;;  %v2820_v2 = vld [vmem:[%s3257_s1 + $0x248] ss:$12 sps:$4 sm:$0xff]  }
 0x18e   : > { %v2821_v3 = vld [vmem:[%s3257_s1 + $0x188] ss:$12 sps:$4 sm:$0xff]  }
 0x18f   : > { %v1188_v8 = vmax.f32 %v1095_v5, 0.0  ;;  %v1197_v13 = vpack.c.bf16 %v1187_v6, %v1183_v9  ;;  %v1191_v6 = vld [vmem:[#allocation2 + $0x28] sm:$0xff] }
 0x191   : > { %v1198_v10 = vpack.c.bf16 %v1188_v8, %v1184_v7 }
 0x193   : > { %1873 = vmatprep.mubr.bf16.mxu0 %v1198_v10 }
 0x194   : > { %1874 = vmatmul.mubr.bf16.vlgmr.msra.gmra.mxu0 %v1197_v13 }
 0x195   : > { %2398 = vmatpush3.bf16.msra.mxu0 %v2770_v12  ;;  %1959 = vmatprep.mubr.bf16.mxu0 %v1198_v10  ;;  %v1192_v10 = vld [vmem:[#allocation2 + $0x10] sm:$0xff] }
 0x196   : > { %2399 = vmatprep.subr.bf16.mxu0 %v2774_v14 }
 0x199   : > { %2400 = vmatpush3.bf16.msra.mxu0 %v2775_v15  ;;  %v1194_v15 = vld [vmem:[#allocation2] sm:$0xff] }
 0x19a   : > { %2401 = vmatprep.subr.bf16.mxu0 %v2779_v16 }
 0x19d   : > { %2402 = vmatpush3.bf16.msra.mxu0 %v2780_v17 }
 0x19e   : > { %2403 = vmatprep.subr.bf16.mxu0 %v2784_v18 }
 0x1a1   : > { %2404 = vmatpush3.bf16.msra.mxu0 %v2785_v19 }
 0x1a2   : > { %2405 = vmatprep.subr.bf16.mxu0 %v2789_v20  ;;  %v1195_v20 = vld [vmem:[#allocation2 + $0x18] sm:$0xff] }
 0x1a4   : > { %v1174_v28 = vpop.f32.mrf.mxu0 }
 0x1a5   : > { %v1131_v27 = vpop.f32.mrf.mxu1  ;;  %2406 = vmatpush3.bf16.msra.mxu0 %v2790_v23 }
 0x1a6   : > { %v1176_v31 = vpop.f32.mrf.mxu0  ;;  %2407 = vmatprep.subr.bf16.mxu0 %v2794_v24  ;;  %v1132_v33 = vadd.f32 %v1131_v27, %v506_v26 }
 0x1a7   : > { %v1133_v30 = vpop.f32.mrf.mxu1 }
 0x1a8   : > { %v1134_v32 = vadd.f32 %v1133_v30, %v510_v25  ;;  %v1178_v35 = vpop.f32.mrf.mxu0  ;;  %v1175_v43 = vadd.f32 %v1174_v28, %v1132_v33 }
 0x1a9   : > { %v1135_v34 = vpop.f32.mrf.mxu1  ;;  %2408 = vmatpush3.bf16.msra.mxu0 %v2795_v29 }
 0x1aa   : > { %v1136_v36 = vadd.f32 %v1135_v34, %v506_v26  ;;  %2409 = vmatprep.subr.bf16.mxu0 %v2799_v11  ;;  %v1177_v40 = vadd.f32 %v1176_v31, %v1134_v32  ;;  %v1180_v45 = vpop.f32.mrf.mxu0  ;;  %v1185_v51 = vmax.f32 %v1175_v43, 0.0  ;;  %v1193_v32 = vld [vmem:[#allocation2 + $0x8] sm:$0xff] }
 0x1ab   : > { %v1137_v38 = vpop.f32.mrf.mxu1 }
 0x1ac   : > { %v1179_v41 = vadd.f32 %v1178_v35, %v1136_v36  ;;  %v1138_v42 = vadd.f32 %v1137_v38, %v510_v25  ;;  %v1186_v49 = vmax.f32 %v1177_v40, 0.0 }
 0x1ad   : > { %2410 = vmatpush3.bf16.msra.mxu0 %v2800_v37 }
 0x1ae   : > { %v1181_v46 = vadd.f32 %v1180_v45, %v1138_v42  ;;  %v1189_v48 = vmax.f32 %v1179_v41, 0.0  ;;  %2411 = vmatprep.subr.bf16.mxu0 %v2804_v39  ;;  %v1196_v39 = vld [vmem:[#allocation2 + $0x20] sm:$0xff] }
 0x1b0   : > { %v1190_v50 = vmax.f32 %v1181_v46, 0.0  ;;  %v1199_v54 = vpack.c.bf16 %v1189_v48, %v1185_v51 }
 0x1b1   : > { %2412 = vmatpush3.bf16.msra.mxu0 %v2805_v47 }
 0x1b2   : > { %v1200_v52 = vpack.c.bf16 %v1190_v50, %v1186_v49 }
 0x1b4   : > { %1916 = vmatprep.mubr.bf16.mxu1 %v1200_v52  ;;  %1960 = vmatmul.mubr.bf16.vlgmr.msra.gmra.mxu0 %v1197_v13 }
 0x1b5   : > { %1917 = vmatmul.mubr.bf16.vlgmr.msra.gmra.mxu1 %v1199_v54 }
 0x1b6   : > { %2420 = vmatpush3.bf16.msra.mxu1 %v2807_v53  ;;  %2000 = vmatprep.mubr.bf16.mxu1 %v1200_v52 }
 0x1b7   : > { %2421 = vmatprep.subr.bf16.mxu1 %v2808_v55 }
 0x1ba   : > { %2422 = vmatpush3.bf16.msra.mxu1 %v2809_v44 }
 0x1bb   : > { %2423 = vmatprep.subr.bf16.mxu1 %v2810_v56 }
 0x1be   : > { %2424 = vmatpush3.bf16.msra.mxu1 %v2811_v57 }
 0x1bf   : > { %2425 = vmatprep.subr.bf16.mxu1 %v2812_v58 }
 0x1c2   : > { %2426 = vmatpush3.bf16.msra.mxu1 %v2813_v59 }
 0x1c3   : > { %2427 = vmatprep.subr.bf16.mxu1 %v2814_v60 }
 0x1c6   : > { %2428 = vmatpush3.bf16.msra.mxu1 %v2815_v61 }
 0x1c7   : > { %2429 = vmatprep.subr.bf16.mxu1 %v2816_v62 }
 0x1ca   : > { %2430 = vmatpush3.bf16.msra.mxu1 %v2817_v63 }
 0x1cb   : > { %2431 = vmatprep.subr.bf16.mxu1 %v2818_v0 }
 0x1ce   : > { %2432 = vmatpush3.bf16.msra.mxu1 %v2819_v1 }
 0x1cf   : > { %2433 = vmatprep.subr.bf16.mxu1 %v2820_v2 }
 0x1d2   : > { %2434 = vmatpush3.bf16.msra.mxu1 %v2821_v3 }
 0x1d5   : > { %2001 = vmatmul.mubr.bf16.vlgmr.msra.gmra.mxu1 %v1199_v54 }
 0x254   : > { %v1875_v4 = vpop.f32.mrf.mxu0 }
 0x256   : > { %v1877_v5 = vpop.f32.mrf.mxu0 }
 0x258   : > { %v1879_v9 = vpop.f32.mrf.mxu0 }
 0x25a   : > { %v1881_v19 = vpop.f32.mrf.mxu0 }
 0x274   : > { %v2413_v25 = vpop.f32.mrf.mxu0 }
 0x275   : > { %v1918_v7 = vpop.f32.mrf.mxu1 }
 0x276   : > { %v1919_v8 = vadd.f32 %v1918_v7, %v1875_v4  ;;  %v2414_v26 = vpop.f32.mrf.mxu0 }
 0x277   : > { %v1920_v12 = vpop.f32.mrf.mxu1  ;;  %v2415_v30 = vadd.f32 %v2414_v26, %v2413_v25 }
 0x278   : > { %v2009_v13 = vadd.f32 %v1919_v8, %v1191_v6  ;;  %v1921_v14 = vadd.f32 %v1920_v12, %v1877_v5  ;;  %v2416_v27 = vpop.f32.mrf.mxu0 }
 0x279   : > { %v1922_v16 = vpop.f32.mrf.mxu1 }
 0x27a   : > { %2015 = vst [vmem:[#allocation2 + $0x28] sm:$0xff] %v2009_v13  ;;  %v2010_v17 = vadd.f32 %v1921_v14, %v1192_v10  ;;  %v1923_v18 = vadd.f32 %v1922_v16, %v1879_v9  ;;  %v2417_v11 = vpop.f32.mrf.mxu0 }
 0x27b   : > { %v1924_v21 = vpop.f32.mrf.mxu1  ;;  %v2418_v36 = vadd.f32 %v2417_v11, %v2416_v27 }
 0x27c   : > { %2016 = vst [vmem:[#allocation2 + $0x10] sm:$0xff] %v2010_v17  ;;  %v2012_v22 = vadd.f32 %v1923_v18, %v1194_v15  ;;  %v1925_v23 = vadd.f32 %v1924_v21, %v1881_v19 }
 0x27e   : > { %2018 = vst [vmem:[#allocation2] sm:$0xff] %v2012_v22  ;;  %v2013_v24 = vadd.f32 %v1925_v23, %v1195_v20 }
 0x280   : > { %2019 = vst [vmem:[#allocation2 + $0x18] sm:$0xff] %v2013_v24 }
 0x295   : > { %v2435_v28 = vpop.f32.mrf.mxu1 }
 0x297   : > { %v2436_v29 = vpop.f32.mrf.mxu1 }
 0x298   : > { %v2437_v31 = vadd.f32 %v2436_v29, %v2435_v28 }
 0x299   : > { %v2438_v33 = vpop.f32.mrf.mxu1 }
 0x29a   : > { %v2003_v34 = vadd.f32 %v2437_v31, %v2415_v30 }
 0x29b   : > { %v2439_v35 = vpop.f32.mrf.mxu1 }
 0x29c   : > { %v2011_v37 = vadd.f32 %v2003_v34, %v1193_v32  ;;  %v2440_v38 = vadd.f32 %v2439_v35, %v2438_v33 }
 0x29e   : > { %2017 = vst [vmem:[#allocation2 + $0x8] sm:$0xff] %v2011_v37  ;;  %v2006_v40 = vadd.f32 %v2440_v38, %v2418_v36  ;;  %2024 = sbr.rel (%p2390_p6) target bundleno = 683 (0x2ab), region = 68 }
 0x2a0   : > { %v2014_v41 = vadd.f32 %v2006_v40, %v1196_v39 }
 0x2a2   : > { %2020 = vst [vmem:[#allocation2 + $0x20] sm:$0xff] %v2014_v41 }
 0x2a3   : > { %v2025_v42 = vld [vmem:[#allocation2 + $0x28] sm:$0xff]  ;;  %v2026_v43 = vld [vmem:[#allocation2 + $0x10] sm:$0xff]  ;;  %v2028_v46 = vld [vmem:[#allocation2] sm:$0xff] }
 0x2a4   : > { %2031 = vst [vmem:[#allocation12] sm:$0xff] %v2025_v42  ;;  %2032 = vst [vmem:[#allocation12 + $0x8] sm:$0xff] %v2026_v43  ;;  %v2029_v47 = vld [vmem:[#allocation2 + $0x18] sm:$0xff] }
 0x2a5   : > { %v2027_v45 = vld [vmem:[#allocation2 + $0x8] sm:$0xff]  ;;  %2034 = vst [vmem:[#allocation12 + $0x18] sm:$0xff] %v2028_v46  ;;  %2035 = vst [vmem:[#allocation12 + $0x20] sm:$0xff] %v2029_v47 }
 0x2a6   : > { %2033 = vst [vmem:[#allocation12 + $0x10] sm:$0xff] %v2027_v45 }
 0x2a9   : > { %v2030_v48 = vld [vmem:[#allocation2 + $0x20] sm:$0xff] }
 0x2aa   : > { %2036 = vst [vmem:[#allocation12 + $0x28] sm:$0xff] %v2030_v48 }
 0x2ab PF: > { %p2485_p2 = scmp.eq.s32.totalorder %s3123_s24, 2  ;;  %s3061_s26 = smov [#allocation12]  }
 0x2ac   : > { %s2047_s13 = sshll.u32 %s3061_s26, 4  ;;  %s2048_s13 = int_to_ptr.vmem [resolvable:$true] %s2047_s13 }
 0x2ad   : > { %s2958_s21 = scalar_lea.vmem %s2048_s13, 768  ;;  %p2965_p13 = scmp.lt.s32.totalorder %s2048_s13, %s2048_s13 }
 0x2ae   : > { %p2959_p5 = scmp.ne.s32.totalorder %s2048_s13, %s2958_s21  ;;  %p2966_p4 = scmp.lt.s32.totalorder %s2958_s21, %s2958_s21 }
 0x2b0   : > { %p2960_p7 = pnand %p2959_p5, %p2485_p2  ;;  %p2967_p3 = por %p2966_p4, %p2965_p13 }
 0x2b2   : > { %p2961_p9 = pneg %p2960_p7 }
 0x2b4   : > { %p2968_p0 = pnand %p2967_p3, %p2961_p9 }
 0x2b6   : > { %2971 = shalt.err (!%p2968_p0)
}
 0x2b7   : > { %s3062_s30 = smov 384   ;;  %s3063_s29 = smov 24  }
 0x2b8   : > { %2460 = dma.vmem_to_hbm [thread:$0]  (%p2485_p2), %s2048_s13, 768, %s3508_s5, [#allocation5], %s3062_s30, %s3062_s30, %s3063_s29  }
 0x2b9   : > { %3023 = dma.done.wait (%p2485_p2), [#allocation5], 768  }
 0x2ba   : > { %3025 = vsyncadd (%p2485_p2), [#allocation5], 4294966528 }
 0x2bb PF: > { %s23_s23 = sadd.s32 1, %s3048_s23   ;;  %s3529_s4 = sld [smem:[#allocation19_spill]] }
 0x2bc   : > { %p20_p10 = scmp.ge.s32.totalorder %s23_s23, 5   ;;  %s3530_s12 = sld [smem:[#allocation18_spill]] }
 0x2bd   : > { %s3531_s18 = smov %s3032_s19  ;;  %s3532_s19 = smov %s3036_s20 }
 0x2be   : > { %s3534_s21 = smov %s3044_s22  ;;  %22 = sbr.rel (!%p20_p10) target bundleno = 11 (0xb), region = 120 }
 0x2c1   : > { %s3533_s20 = smov %s3529_s4 }
 0x2c2   : > { %s3535_s22 = smov %s3530_s12 }
 0x2c3   :  { %2063 = vsyncpa [#allocation4], 1 }
 0x2c4   :  { %2065 = vsyncpa [#allocation4 + $0x1], 1 }
 0x2c5   :  { %2066 = vsyncpa [#allocation7], 1 }
 0x2c6   :  { %2068 = vsyncpa [#allocation7 + $0x1], 1 }
 0x2c7   :  { %2069 = vsyncpa [#allocation10], 1 }
 0x2c8   :  { %2071 = vsyncpa [#allocation10 + $0x1], 1 }
 0x2c9   :  { %2072 = vsyncpa [#allocation5], 1 }
 0x2ca   :  { %2074 = vsyncpa [#allocation5 + $0x1], 1 }

</bundles_post_ra>
